<compile_context>
chip_gen: v5e
topology: v5e:2x2
jax: 0.10.0
libtpu: 0.0.40
codegen_flags: <defaults>
</compile_context>

<pallas_src>
import math
import functools

import jax
import jax.numpy as jnp
from jax import lax
from jax.experimental import pallas as pl
from jax.experimental.pallas import tpu as pltpu


_VMEM_LIMIT = 32 * 1024 * 1024  # safe on v5e/v6e (128 MiB) and v7x (64 MiB)


# ------------------------------ tiling helpers ------------------------------

def _pick_tile(dim, target, quantum):
    """Largest multiple of `quantum` that divides `dim` and is <= `target`.
    Falls back to the full dimension (a full-extent block is always legal)."""
    if dim <= target:
        return dim
    t = (target // quantum) * quantum
    while t >= quantum:
        if dim % t == 0:
            return t
        t -= quantum
    return dim


# ------------------------------ linear kernels ------------------------------

def _linear_bias_kernel(x_ref, w_ref, b_ref, o_ref, acc_ref):
    k = pl.program_id(2)

    @pl.when(k == 0)
    def _():
        acc_ref[...] = jnp.zeros_like(acc_ref)

    acc_ref[...] += jnp.dot(x_ref[...], w_ref[...],
                            preferred_element_type=jnp.float32)

    @pl.when(k == pl.num_programs(2) - 1)
    def _():
        o_ref[...] = (acc_ref[...] + b_ref[...].astype(jnp.float32)).astype(o_ref.dtype)


def _linear_nobias_kernel(x_ref, w_ref, o_ref, acc_ref):
    k = pl.program_id(2)

    @pl.when(k == 0)
    def _():
        acc_ref[...] = jnp.zeros_like(acc_ref)

    acc_ref[...] += jnp.dot(x_ref[...], w_ref[...],
                            preferred_element_type=jnp.float32)

    @pl.when(k == pl.num_programs(2) - 1)
    def _():
        o_ref[...] = acc_ref[...].astype(o_ref.dtype)


def linear_pallas(x, w_t, b=None, *, out_dtype=None,
                  tm_target=512, tn_target=512, tk_target=1024):
    """x: [M, K], w_t: [K, N] (transposed from torch [out, in]), b: [N] or None.

    x / w_t are expected in bf16 (MXU peak path); accumulation is fp32.
    At 512x512x1024 bf16 the double-buffered blocks are ~5-6 MiB, far under the
    32 MiB limit on every generation (no v7x-specific cap needed at this size).
    For tiny test shapes the full extent is used (single grid step).
    """
    M, K = x.shape
    N = w_t.shape[1]
    if out_dtype is None:
        out_dtype = x.dtype
    tm = _pick_tile(M, tm_target, 8)
    tn = _pick_tile(N, tn_target, 128)
    tk = _pick_tile(K, tk_target, 128)
    grid = (M // tm, N // tn, K // tk)

    x_spec = pl.BlockSpec((tm, tk), lambda i, j, k: (i, k))
    w_spec = pl.BlockSpec((tk, tn), lambda i, j, k: (k, j))
    o_spec = pl.BlockSpec((tm, tn), lambda i, j, k: (i, j))
    scratch = [pltpu.VMEM((tm, tn), jnp.float32)]
    cparams = pltpu.CompilerParams(
        dimension_semantics=("parallel", "parallel", "arbitrary"),
        vmem_limit_bytes=_VMEM_LIMIT)

    if b is not None:
        b2 = b.reshape(1, N).astype(jnp.float32)
        b_spec = pl.BlockSpec((1, tn), lambda i, j, k: (0, j))
        return pl.pallas_call(
            _linear_bias_kernel,
            out_shape=jax.ShapeDtypeStruct((M, N), out_dtype),
            grid=grid,
            in_specs=[x_spec, w_spec, b_spec],
            out_specs=o_spec,
            scratch_shapes=scratch,
            compiler_params=cparams,
        )(x, w_t, b2)

    return pl.pallas_call(
        _linear_nobias_kernel,
        out_shape=jax.ShapeDtypeStruct((M, N), out_dtype),
        grid=grid,
        in_specs=[x_spec, w_spec],
        out_specs=o_spec,
        scratch_shapes=scratch,
        compiler_params=cparams,
    )(x, w_t)


# --------------------------- flash attention kernel --------------------------

_NEG_INF = -1e30


def _flash_attn_kernel(qidx_ref, kidx_ref, q_ref, k_ref, v_ref, o_ref,
                       m_ref, l_ref, acc_ref, *, scale, tq, tk):
    # Refs (after squeezing batch/head dims): q (tq,hd), k/v (tk,hd), o (tq,hd).
    # The last grid axis walks a flattened lower-triangular (qi, ki) schedule;
    # the actual tile coordinates come from the scalar-prefetched tables.
    si = pl.program_id(2)
    qi = qidx_ref[si]
    ki = kidx_ref[si]

    @pl.when(ki == 0)
    def _():
        m_ref[...] = jnp.full_like(m_ref, -jnp.inf)
        l_ref[...] = jnp.zeros_like(l_ref)
        acc_ref[...] = jnp.zeros_like(acc_ref)

    def _step(apply_mask):
        q = q_ref[...]
        k = k_ref[...]
        # scores (tq, tk) accumulate in fp32; MXU inputs stay bf16.
        s = lax.dot_general(q, k, (((1,), (1,)), ((), ())),
                            preferred_element_type=jnp.float32) * scale
        if apply_mask:
            row = qi * tq + lax.broadcasted_iota(jnp.int32, (tq, tk), 0)
            col = ki * tk + lax.broadcasted_iota(jnp.int32, (tq, tk), 1)
            s = jnp.where(col <= row, s, _NEG_INF)

        m_prev = m_ref[...]
        m_new = jnp.maximum(m_prev, jnp.max(s, axis=-1, keepdims=True))
        alpha = jnp.exp(m_prev - m_new)
        p = jnp.exp(s - m_new)
        l_ref[...] = alpha * l_ref[...] + jnp.sum(p, axis=-1, keepdims=True)
        acc_ref[...] = alpha * acc_ref[...] + jnp.dot(
            p.astype(v_ref.dtype), v_ref[...], preferred_element_type=jnp.float32)
        m_ref[...] = m_new

    # Only tiles that straddle the diagonal need the causal mask; interior
    # tiles skip the iota/compare/select entirely (pure VPU savings).
    straddles = ki * tk + (tk - 1) > qi * tq

    @pl.when(straddles)
    def _():
        _step(True)

    @pl.when(jnp.logical_not(straddles))
    def _():
        _step(False)

    last_k = (qi * tq + (tq - 1)) // tk

    @pl.when(ki == last_k)
    def _():
        inv_l = pl.reciprocal(l_ref[...], approx=True)   # EUP, off the VPU hot path
        o_ref[...] = (acc_ref[...] * inv_l).astype(o_ref.dtype)


def flash_attention_pallas(q, k, v, *, tq_target=256, tk_target=512):
    """Causal GQA flash attention.

    q: [b, nh, s, hd]; k, v: [b, ng, s, hd] with ng | nh. Returns [b, nh, s, hd].
    Grid: (b, nh, n_tri_steps) where the last axis only visits causally-needed
    (qi, ki) tile pairs (scalar-prefetched lookup tables feed the index_maps).
    VMEM usage is O(tq*hd + tk*hd + tq*tk) per step (no S x S materialization).
    """
    b, nh, s, hd = q.shape
    ng = k.shape[1]
    rep = nh // ng
    tq = _pick_tile(s, tq_target, 8)
    tk = _pick_tile(s, tk_target, 8)
    n_q, n_kv = s // tq, s // tk
    scale = 1.0 / math.sqrt(hd)

    # Flattened lower-triangular schedule (qi-major so each output block is
    # visited by a contiguous run of steps -> standard accumulator pattern).
    qi_list, ki_list = [], []
    for qi in range(n_q):
        last_k = (qi * tq + (tq - 1)) // tk
        for ki in range(last_k + 1):
            qi_list.append(qi)
            ki_list.append(ki)
    qi_arr = jnp.asarray(qi_list, dtype=jnp.int32)
    ki_arr = jnp.asarray(ki_list, dtype=jnp.int32)
    n_steps = len(qi_list)

    def q_map(bi, hi, si, qidx, kidx):
        return (bi, hi, qidx[si], 0)

    def kv_map(bi, hi, si, qidx, kidx):
        # GQA: map head -> its KV group inside the index_map (no materialized
        # rep-times broadcast of K/V in HBM).
        return (bi, hi // rep, kidx[si], 0)

    def o_map(bi, hi, si, qidx, kidx):
        return (bi, hi, qidx[si], 0)

    kernel = functools.partial(_flash_attn_kernel, scale=scale, tq=tq, tk=tk)
    return pl.pallas_call(
        kernel,
        out_shape=jax.ShapeDtypeStruct((b, nh, s, hd), q.dtype),
        grid_spec=pltpu.PrefetchScalarGridSpec(
            num_scalar_prefetch=2,
            grid=(b, nh, n_steps),
            in_specs=[
                pl.BlockSpec((None, None, tq, hd), q_map),
                pl.BlockSpec((None, None, tk, hd), kv_map),
                pl.BlockSpec((None, None, tk, hd), kv_map),
            ],
            out_specs=pl.BlockSpec((None, None, tq, hd), o_map),
            scratch_shapes=[
                pltpu.VMEM((tq, 1), jnp.float32),    # running max
                pltpu.VMEM((tq, 1), jnp.float32),    # running sum
                pltpu.VMEM((tq, hd), jnp.float32),   # output accumulator
            ],
        ),
        # b*nh parallel product feeds both v7x TensorCores for realistic nh;
        # the triangular axis is the (sequential) reduction axis.
        compiler_params=pltpu.CompilerParams(
            dimension_semantics=("parallel", "parallel", "arbitrary"),
            vmem_limit_bytes=_VMEM_LIMIT),
    )(qi_arr, ki_arr, q, k, v)


# ----------------------------- JAX glue (reshapes, rope) ---------------------

def apply_rotary_pos_emb(x, rope_cache):
    """ChatGLM2 rotary. x: [sq, b, np, hn], rope_cache: [sq, n_elem, 2]."""
    # TODO(synk): RoPE could be fused into the attention/QKV kernels (pltpu.roll
    # on the loaded q/k tiles) to save two HBM read-modify-write passes.
    sq, b, nh, hn = x.shape
    n_elem = rope_cache.shape[-2]
    rot_dim = n_elem * 2
    x_rot, x_pass = x[..., :rot_dim], x[..., rot_dim:]
    xs = x_rot.reshape(sq, b, nh, n_elem, 2)
    rc = rope_cache.reshape(sq, 1, 1, n_elem, 2)
    x0, x1 = xs[..., 0], xs[..., 1]
    cos, sin = rc[..., 0], rc[..., 1]
    out = jnp.stack([x0 * cos - x1 * sin, x1 * cos + x0 * sin], axis=-1)
    return jnp.concatenate([out.reshape(sq, b, nh, rot_dim),
                            x_pass.astype(out.dtype)], axis=-1)


def self_attention_forward(params, cfg, hidden_states, rope_cache,
                           *, tq_target=256, tk_target=512):
    """hidden_states: [s, b, h].  Returns (output [s,b,h], kv_cache)."""
    s, b, h = hidden_states.shape
    nh = cfg["num_attention_heads"]
    ng = cfg["multi_query_group_num"]
    hd = cfg["kv_channels"]
    proj = nh * hd
    cdt = jnp.bfloat16   # MXU input dtype; accumulation stays fp32 in-kernel

    # --- QKV projection (tiled Pallas matmul, bias: add_qkv_bias=True) ---
    x2d = hidden_states.astype(cdt).reshape(s * b, h)
    w_qkv = params["w_qkv_t"].astype(cdt)
    w_dense = params["w_dense_t"].astype(cdt)

    qkv = linear_pallas(x2d, w_qkv, params["b_qkv"], out_dtype=cdt)
    qkv = qkv.reshape(s, b, -1)

    q, k, v = jnp.split(qkv, [nh * hd, nh * hd + ng * hd], axis=-1)
    q = q.reshape(s, b, nh, hd)
    k = k.reshape(s, b, ng, hd)
    v = v.reshape(s, b, ng, hd)

    # --- rotary position embedding (fp32 math, bf16 storage) ---
    q = apply_rotary_pos_emb(q, rope_cache).astype(cdt)
    k = apply_rotary_pos_emb(k, rope_cache).astype(cdt)

    kv_cache = (k, v)  # use_cache=True, kv_cache=None on input

    # --- core attention (flash kernel); K/V stay at ng groups (GQA in index_map)
    # TODO(synk): the [s,b,...] <-> [b,heads,s,hd] permutes remain XLA glue; the
    # direct-layout BlockSpec (tq,None,None,hd) would put a size-1 block on the
    # second-to-minor array dim, which violates the (8,128) block constraint, so
    # the transposes are kept for a guaranteed-legal layout.
    q_ = jnp.transpose(q, (1, 2, 0, 3))   # [b, nh, s, hd]
    k_ = jnp.transpose(k, (1, 2, 0, 3))   # [b, ng, s, hd]
    v_ = jnp.transpose(v, (1, 2, 0, 3))   # [b, ng, s, hd]
    ctx = flash_attention_pallas(q_, k_, v_, tq_target=tq_target, tk_target=tk_target)
    ctx = jnp.transpose(ctx, (2, 0, 1, 3)).reshape(s * b, proj)

    # --- dense projection (tiled Pallas matmul, add_bias_linear=False) ---
    out = linear_pallas(ctx, w_dense, None, out_dtype=hidden_states.dtype)
    return out.reshape(s, b, h), kv_cache


# ----------------------------- pure-JAX reference ----------------------------

def reference_forward(params, cfg, hidden_states, rope_cache):
    """Reference with matching precision policy (bf16 MXU inputs, fp32 accum)."""
    s, b, h = hidden_states.shape
    nh = cfg["num_attention_heads"]
    ng = cfg["multi_query_group_num"]
    hd = cfg["kv_channels"]
    proj = nh * hd
    cdt = jnp.bfloat16

    x16 = hidden_states.astype(cdt).reshape(s * b, h)
    qkv = (jnp.dot(x16, params["w_qkv_t"].astype(cdt),
                   preferred_element_type=jnp.float32) + params["b_qkv"]).astype(cdt)
    qkv = qkv.reshape(s, b, -1)
    q, k, v = jnp.split(qkv, [nh * hd, nh * hd + ng * hd], axis=-1)
    q = apply_rotary_pos_emb(q.reshape(s, b, nh, hd), rope_cache).astype(cdt)
    k = apply_rotary_pos_emb(k.reshape(s, b, ng, hd), rope_cache).astype(cdt)
    v = v.reshape(s, b, ng, hd)

    rep = nh // ng
    k_exp = jnp.broadcast_to(k[:, :, :, None, :], (s, b, ng, rep, hd)).reshape(s, b, nh, hd)
    v_exp = jnp.broadcast_to(v[:, :, :, None, :], (s, b, ng, rep, hd)).reshape(s, b, nh, hd)

    qb = jnp.transpose(q, (1, 2, 0, 3))
    kb = jnp.transpose(k_exp, (1, 2, 0, 3))
    vb = jnp.transpose(v_exp, (1, 2, 0, 3))
    scores = jnp.einsum("bhqd,bhkd->bhqk", qb, kb,
                        preferred_element_type=jnp.float32) / math.sqrt(hd)
    mask = jnp.tril(jnp.ones((s, s), dtype=bool))
    scores = jnp.where(mask, scores, -1e30)
    probs = jax.nn.softmax(scores, axis=-1)
    ctx = jnp.einsum("bhqk,bhkd->bhqd", probs.astype(cdt), vb,
                     preferred_element_type=jnp.float32).astype(cdt)
    ctx = jnp.transpose(ctx, (2, 0, 1, 3)).reshape(s * b, proj)
    out = jnp.dot(ctx, params["w_dense_t"].astype(cdt),
                  preferred_element_type=jnp.float32)
    return out.reshape(s, b, h).astype(hidden_states.dtype)


# ----------------------------- main -------------------------------------------

def build_rope_cache(seq_len, head_dim, base=10000.0):
    # ChatGLM2: RotaryEmbedding(dim = head_dim // 2); cache has head_dim // 4 freqs.
    rot_dim = head_dim // 2
    theta = 1.0 / (base ** (jnp.arange(0, rot_dim, 2, dtype=jnp.float32) / rot_dim))
    pos = jnp.arange(seq_len, dtype=jnp.float32)
    idx_theta = jnp.outer(pos, theta)                    # [seq, n_elem]
    return jnp.stack([jnp.cos(idx_theta), jnp.sin(idx_theta)], axis=-1)


def _make_params(key, hidden, qkv_hidden, proj):
    k1, k2, k3 = jax.random.split(key, 3)
    return {
        # torch Linear weight is [out, in]; store the transposed [in, out] for x @ W^T.
        "w_qkv_t":   jax.random.normal(k1, (hidden, qkv_hidden), jnp.float32) * 0.05,
        "b_qkv":     jax.random.normal(k2, (qkv_hidden,), jnp.float32) * 0.05,   # add_qkv_bias=True
        "w_dense_t": jax.random.normal(k3, (proj, hidden), jnp.float32) * 0.05,  # add_bias_linear=False
    }


def _run_case(key, cfg, seq, batch, tq_target, tk_target):
    nh, hd, ng = cfg["num_attention_heads"], cfg["kv_channels"], cfg["multi_query_group_num"]
    proj = nh * hd
    qkv_hidden = proj + 2 * hd * ng
    hidden = cfg["hidden_size"]

    kp, kx = jax.random.split(key)
    params = _make_params(kp, hidden, qkv_hidden, proj)
    hidden_states = jax.random.normal(kx, (seq, batch, hidden), jnp.float32)
    rope_cache = build_rope_cache(seq, hd)

    out, kv_cache = self_attention_forward(params, cfg, hidden_states, rope_cache,
                                           tq_target=tq_target, tk_target=tk_target)
    out = jax.block_until_ready(out)
    jax.block_until_ready(kv_cache)

    ref = reference_forward(params, cfg, hidden_states, rope_cache)
    assert out.shape == (seq, batch, hidden)
    err = jnp.max(jnp.abs(out - ref))
    # tolerance covers bf16 MXU inputs + approx-reciprocal softmax normalization
    assert jnp.allclose(out, ref, atol=2e-2, rtol=2e-2), \
        f"mismatch vs reference, max abs err={err}"


if __name__ == "__main__":
    key = jax.random.PRNGKey(0)
    k_small, k_med = jax.random.split(key)

    # Small config matching the module's toy shapes (single-tile path,
    # diagonal-straddling / masked branch).
    cfg_small = dict(hidden_size=32, num_attention_heads=4, kv_channels=8,
                     multi_query_group_num=2)
    _run_case(k_small, cfg_small, seq=8, batch=2, tq_target=256, tk_target=512)

    # Larger config that exercises the triangular-grid flash attention
    # (10 visited (qi,ki) steps out of a 4x4 rectangle), the mask-free interior
    # fast path, the GQA index_map and accumulator init/finalize.
    cfg_med = dict(hidden_size=256, num_attention_heads=4, kv_channels=64,
                   multi_query_group_num=2)
    _run_case(k_med, cfg_med, seq=256, batch=1, tq_target=64, tk_target=64)

    # TODO(synk): attention_mask-driven (non-causal) path, kv_cache concat and
    # attention dropout are not exercised (forward called with mask=None,
    # kv_cache=None, eval-mode dropout).
    print("KERNEL_OK")
</pallas_src>

<mosaic_0001>
module attributes {stable_mosaic.version = 11 : i64} {
  func.func @_linear_bias_kernel(%arg0: i32, %arg1: i32, %arg2: i32, %arg3: memref<16x32xbf16, #tpu.memory_space<vmem>>, %arg4: memref<32x64xbf16, #tpu.memory_space<vmem>>, %arg5: memref<1x64xf32, #tpu.memory_space<vmem>>, %arg6: memref<16x64xbf16, #tpu.memory_space<vmem>>, %arg7: memref<16x64xf32, #tpu.memory_space<vmem>>) attributes {dimension_semantics = [#tpu.dimension_semantics<parallel>, #tpu.dimension_semantics<parallel>, #tpu.dimension_semantics<arbitrary>], iteration_bounds = array<i64: 1, 1, 1>, scalar_prefetch = 0 : i64, scratch_operands = 1 : i64, tpu.core_type = #tpu.core_type<tc>, window_params = [{transform_indices = @transform_0, window_bounds = array<i64: 16, 32>}, {transform_indices = @transform_1, window_bounds = array<i64: 32, 64>}, {transform_indices = @transform_2, window_bounds = array<i64: 1, 64>}, {transform_indices = @transform_3, window_bounds = array<i64: 16, 64>}]} {
    %c0_i32 = arith.constant 0 : i32
    %0 = arith.cmpi eq, %arg2, %c0_i32 : i32
    %1 = arith.extui %0 : i1 to i32
    %c0_i32_0 = arith.constant 0 : i32
    %2 = arith.cmpi ne, %1, %c0_i32_0 : i32
    scf.if %2 {
      %cst_10 = arith.constant 0.000000e+00 : f32
      %12 = vector.broadcast %cst_10 : f32 to vector<16x64xf32>
      %c0_11 = arith.constant 0 : index
      %c0_12 = arith.constant 0 : index
      %13 = vector.load %arg7[%c0_11, %c0_12] : memref<16x64xf32, #tpu.memory_space<vmem>>, vector<16x64xf32>
      tpu.vector_store %arg7[%c0_11, %c0_12], %12 {strides = array<i32>} : memref<16x64xf32, #tpu.memory_space<vmem>>, vector<16x64xf32>,
    } else {
    }
    %c0 = arith.constant 0 : index
    %c0_1 = arith.constant 0 : index
    %3 = vector.load %arg7[%c0, %c0_1] : memref<16x64xf32, #tpu.memory_space<vmem>>, vector<16x64xf32>
    %c0_2 = arith.constant 0 : index
    %c0_3 = arith.constant 0 : index
    %4 = vector.load %arg3[%c0_2, %c0_3] : memref<16x32xbf16, #tpu.memory_space<vmem>>, vector<16x32xbf16>
    %c0_4 = arith.constant 0 : index
    %c0_5 = arith.constant 0 : index
    %5 = vector.load %arg4[%c0_4, %c0_5] : memref<32x64xbf16, #tpu.memory_space<vmem>>, vector<32x64xbf16>
    %cst = arith.constant dense<0.000000e+00> : vector<16x64xf32>
    %6 = tpu.matmul %4, %5, %cst {dimension_numbers = #tpu.dot_dimension_numbers<[1], [0], [0], [1], [0, 0, 1, 1], [], []>} : vector<16x32xbf16>, vector<32x64xbf16>, vector<16x64xf32> -> vector<16x64xf32>
    %7 = arith.addf %3, %6 : vector<16x64xf32>
    %c0_6 = arith.constant 0 : index
    %c0_7 = arith.constant 0 : index
    %8 = vector.load %arg7[%c0_6, %c0_7] : memref<16x64xf32, #tpu.memory_space<vmem>>, vector<16x64xf32>
    tpu.vector_store %arg7[%c0_6, %c0_7], %7 {strides = array<i32>} : memref<16x64xf32, #tpu.memory_space<vmem>>, vector<16x64xf32>,
    %c0_i32_8 = arith.constant 0 : i32
    %9 = arith.cmpi eq, %arg2, %c0_i32_8 : i32
    %10 = arith.extui %9 : i1 to i32
    %c0_i32_9 = arith.constant 0 : i32
    %11 = arith.cmpi ne, %10, %c0_i32_9 : i32
    scf.if %11 {
      %c0_10 = arith.constant 0 : index
      %c0_11 = arith.constant 0 : index
      %12 = vector.load %arg7[%c0_10, %c0_11] : memref<16x64xf32, #tpu.memory_space<vmem>>, vector<16x64xf32>
      %c0_12 = arith.constant 0 : index
      %c0_13 = arith.constant 0 : index
      %13 = vector.load %arg5[%c0_12, %c0_13] : memref<1x64xf32, #tpu.memory_space<vmem>>, vector<1x64xf32>
      %14 = vector.broadcast %13 : vector<1x64xf32> to vector<16x64xf32>
      %15 = arith.addf %12, %14 : vector<16x64xf32>
      %16 = arith.truncf %15 : vector<16x64xf32> to vector<16x64xbf16>
      %c0_14 = arith.constant 0 : index
      %c0_15 = arith.constant 0 : index
      %17 = vector.load %arg6[%c0_14, %c0_15] : memref<16x64xbf16, #tpu.memory_space<vmem>>, vector<16x64xbf16>
      tpu.vector_store %arg6[%c0_14, %c0_15], %16 {strides = array<i32>} : memref<16x64xbf16, #tpu.memory_space<vmem>>, vector<16x64xbf16>,
    } else {
    }
    return
  }
  func.func @transform_0(%arg0: i32, %arg1: i32, %arg2: i32) -> (i32, i32) {
    %c0_i32 = arith.constant 0 : i32
    return %arg0, %arg2 : i32, i32
  }
  func.func @transform_1(%arg0: i32, %arg1: i32, %arg2: i32) -> (i32, i32) {
    %c0_i32 = arith.constant 0 : i32
    return %arg2, %arg1 : i32, i32
  }
  func.func @transform_2(%arg0: i32, %arg1: i32, %arg2: i32) -> (i32, i32) {
    %c0_i32 = arith.constant 0 : i32
    %c0_i32_0 = arith.constant 0 : i32
    return %c0_i32, %arg1 : i32, i32
  }
  func.func @transform_3(%arg0: i32, %arg1: i32, %arg2: i32) -> (i32, i32) {
    %c0_i32 = arith.constant 0 : i32
    return %arg0, %arg1 : i32, i32
  }
}

</mosaic_0001>

<bundles_post_ra>
// kernel: tpu_custom_call.1
= control target key start
LH: loop header
LB: loop body
LE: loop exit
PB: predicated region body
PF: predicated region fallthrough
CT: control target
= control target key end

     0   :  { %8 = vsyncpa [#allocation4], 0  ;;  %s291_s0 = inlined_call_operand.hbm [shape: bf16[16,32], index: 0, kind: input, shape index: {}]   ;;  %s292_s1 = inlined_call_operand.hbm [shape: bf16[32,64], index: 1, kind: input, shape index: {}]   ;;  %s293_s2 = inlined_call_operand.vmem [shape: f32[1,64], index: 2, kind: input, shape index: {}]   ;;  %s294_s3 = inlined_call_operand.hbm [shape: bf16[16,64], index: 3, kind: output, shape index: {}]  }
   0x1   :  { %9 = vsyncpa [#allocation7], 0 }
   0x2   :  { %10 = vsyncpa [#allocation5], 0  ;;  %s15_s14 = sshll.u32 %s291_s0, 4  ;;  %s240_s15 = smov [#allocation3]   ;;  %s16_s14 = int_to_ptr.hbm [resolvable:$true] %s15_s14 }
   0x3   :  { %s17_s16 = sshll.u32 %s240_s15, 4  ;;  %s28_s19 = sshll.u32 %s292_s1, 4  ;;  %s18_s16 = int_to_ptr.vmem [resolvable:$true] %s17_s16  ;;  %s29_s19 = int_to_ptr.hbm [resolvable:$true] %s28_s19 }
   0x4   :  { %s241_s20 = smov 64   ;;  %s242_s21 = smov 4  }
   0x5   :  { %23 = dma.hbm_to_vmem [thread:$0]  %s16_s14, 128, %s18_s16, [#allocation4], %s241_s20, %s241_s20, %s242_s21  }
   0x6   :  { %s243_s22 = smov [#allocation6]  }
   0x7   :  { %s30_s23 = sshll.u32 %s243_s22, 4  ;;  %s31_s23 = int_to_ptr.vmem [resolvable:$true] %s30_s23 }
   0x8   :  { %36 = dma.hbm_to_vmem [thread:$0]  %s29_s19, 256, %s31_s23, [#allocation7], %s241_s20, %s241_s20, %s242_s21  }
   0x9   :  { %234 = dma.done.wait [#allocation4], 128  }
   0xa   :  { %235 = vsyncadd [#allocation4], 4294967168 }
   0xb   :  { %236 = dma.done.wait [#allocation7], 256  }
   0xc   :  { %237 = vsyncadd [#allocation7], 4294967040  ;;  %vm52_vm0 = vcmask 523264   ;;  %v244_v0 = vmov 0.0   ;;  %v154_v1 = vld [vmem:[#allocation6 + $0x8] sm:$0xff]  ;;  %v153_v2 = vld [vmem:[#allocation6] sm:$0xff] }
   0xd   :  { %53 = vst.msk [vmem:[#allocation2] sm:$0xff] %vm52_vm0, %v244_v0  ;;  %90 = vmatpush.bf16.msra.mxu0 %v154_v1  ;;  %v152_v3 = vld [vmem:[#allocation3] sm:$0xff]  ;;  %vm80_vm1 = vcmask 261120   ;;  %v161_v8 = vld [vmem:[%s293_s2] ss:$0 sm:$0xff]  ;;  %vm116_vm2 = vcmask 519168  }
   0xe   :  { %54 = vst.msk [vmem:[#allocation2 + $0x8] sm:$0xff] %vm52_vm0, %v244_v0  ;;  %s245_s24 = smov [#allocation8]   ;;  %s125_s28 = sshll.u32 %s294_s3, 4  ;;  %s126_s28 = int_to_ptr.hbm [resolvable:$true] %s125_s28 }
   0xf   :  { %s123_s25 = sshll.u32 %s245_s24, 4  ;;  %s124_s25 = int_to_ptr.vmem [resolvable:$true] %s123_s25 }
  0x11   :  { %91 = vmatpush.bf16.msra.mxu0 %v153_v2 }
  0x14   :  { %151 = vmatmul.msk.bf16.vlgmr.msra.gmra.mxu0 %vm80_vm1, %v152_v3  ;;  %v55_v4 = vld [vmem:[#allocation2] sm:$0xff] }
  0x15   :  { %v56_v7 = vld [vmem:[#allocation2 + $0x8] sm:$0xff] }
  0x91   :  { %v93_v5 = vpop.f32.mrf.mxu0 }
  0x92   :  { %v98_v6 = vadd.f32 %v93_v5, %v55_v4 }
  0x94   :  { %101 = vst.msk [vmem:[#allocation2] sm:$0xff] %vm52_vm0, %v98_v6 }
  0x99   :  { %v95_v9 = vpop.f32.mrf.mxu0 }
  0x9a   :  { %v99_v10 = vadd.f32 %v95_v9, %v56_v7 }
  0x9b   :  { %v106_v11 = vld [vmem:[#allocation2] sm:$0xff] }
  0x9c   :  { %102 = vst.msk [vmem:[#allocation2 + $0x8] sm:$0xff] %vm52_vm0, %v99_v10  ;;  %v112_v12 = vadd.f32 %v161_v8, %v106_v11 }
  0x9e   :  { %v114_v13 = vpack.c.bf16 %v112_v12, %v112_v12 }
  0xa0   :  { %117 = vst.msk [vmem:[#allocation8] sm:$0xf] %vm116_vm2, %v114_v13 }
  0xa3   :  { %v107_v14 = vld [vmem:[#allocation2 + $0x8] sm:$0xff] }
  0xa4   :  { %v113_v15 = vadd.f32 %v161_v8, %v107_v14 }
  0xa6   :  { %v115_v16 = vpack.c.bf16 %v113_v15, %v113_v15 }
  0xa8   :  { %118 = vst.msk [vmem:[#allocation8 + $0x4] sm:$0xf] %vm116_vm2, %v115_v16 }
  0xa9   :  { %131 = dma.vmem_to_hbm [thread:$0]  %s124_s25, 128, %s126_s28, [#allocation5], %s241_s20, %s241_s20, %s242_s21  }
  0xaa   :  { %238 = dma.done.wait [#allocation5], 128  }
  0xab   :  { %239 = vsyncadd [#allocation5], 4294967168 }
  0xac   :  { %136 = vsyncpa [#allocation4], 1 }
  0xad   :  { %137 = vsyncpa [#allocation7], 1 }
  0xae   :  { %138 = vsyncpa [#allocation5], 1 }

</bundles_post_ra>
